<compile_context>
chip_gen: v5e
topology: v5e:2x2
jax: 0.10.0
libtpu: 0.0.40
codegen_flags: <defaults>
</compile_context>

<pallas_src>
import functools

import jax
import jax.numpy as jnp
from jax.experimental import pallas as pl
from jax.experimental.pallas import tpu as pltpu


_LANE = 128                        # TPU lane width (fast axis)
_MAX_TIME_TILE = 8192              # max lanes per time tile
_MAX_TILE_BYTES = 2 * 1024 * 1024  # per-block budget; double-buffered in+out ~8 MiB


def _round_up(x: int, m: int) -> int:
    return ((x + m - 1) // m) * m


def _pick_time_tile(time_len: int, batch: int, itemsize: int,
                    max_time_tile: int | None = None) -> int:
    """Lane-aligned time tile, bounded so pipelined blocks stay small in VMEM."""
    cap = _MAX_TIME_TILE if max_time_tile is None else max_time_tile
    cap = max(_LANE, (cap // _LANE) * _LANE)
    aligned = _round_up(max(time_len, 1), _LANE)
    budget_lanes = (_MAX_TILE_BYTES // max(batch * itemsize, 1)) // _LANE * _LANE
    return max(_LANE, min(aligned, cap, max(budget_lanes, _LANE)))


# ----------------------------------------------------------------------------
# Pallas kernels
# ----------------------------------------------------------------------------
def _copy_kernel(x_ref, o_ref):
    """Truncation path: straight lane-dense tile copy (only the first
    buffer_size samples are ever DMA'd by the BlockSpec)."""
    o_ref[...] = x_ref[...]


def _pad_small_kernel(x_ref, o_ref, *, n_in: int):
    """Pad path when the whole input fits inside one time tile.
    Zero-fill the tile (lane-dense store), then overwrite the valid prefix."""
    i = pl.program_id(0)
    o_ref[...] = jnp.zeros_like(o_ref)

    @pl.when(i == 0)
    def _():
        o_ref[:, :n_in] = x_ref[...]


def _pad_tiled_kernel(x_ref, o_ref, *, seam_block: int, rem: int):
    """Pad path when the input spans multiple time tiles.
    Tiles before the seam copy, tiles past the seam write zeros, the seam tile
    zero-fills then stores the valid prefix (single masked store)."""
    i = pl.program_id(0)

    @pl.when(i < seam_block)
    def _():
        o_ref[...] = x_ref[...]

    @pl.when(i > seam_block)
    def _():
        o_ref[...] = jnp.zeros_like(o_ref)

    @pl.when(i == seam_block)
    def _():
        o_ref[...] = jnp.zeros_like(o_ref)
        if rem > 0:  # static seam position (trace time)
            o_ref[:, :rem] = x_ref[:, :rem]


def _make_scale_kernel(scale: float):
    """Elementwise x * scale with the scalar baked in as a constant."""
    def kernel(x_ref, o_ref):
        o_ref[...] = x_ref[...] * jnp.asarray(scale, dtype=o_ref.dtype)
    return kernel


# ----------------------------------------------------------------------------
# Wrappers
# ----------------------------------------------------------------------------
def to_buffer_size(signal: jax.Array, buffer_size: int,
                   max_time_tile: int | None = None) -> jax.Array:
    """Pallas equivalent of SynthModule.to_buffer_size (util.fix_length).

    Truncates longer signals and zero-pads shorter ones along the last (time)
    axis, using a pipelined 1-D grid over lane-aligned time tiles.
    """
    batch, n_in = signal.shape
    buffer_size = int(buffer_size)

    if n_in == 0:
        # Degenerate empty-signal case: output is all zeros.
        return jnp.zeros((batch, buffer_size), dtype=signal.dtype)

    t = _pick_time_tile(buffer_size, batch, jnp.dtype(signal.dtype).itemsize,
                        max_time_tile)
    grid_t = pl.cdiv(buffer_size, t)
    compiler_params = pltpu.CompilerParams(dimension_semantics=("parallel",))
    out_shape = jax.ShapeDtypeStruct((batch, buffer_size), signal.dtype)
    out_spec = pl.BlockSpec((batch, t), lambda i: (0, i))

    if n_in >= buffer_size:
        # Truncate (or exact length): the input spec only ever touches the
        # first grid_t * t samples -> HBM read bytes ~ buffer_size, not n_in.
        return pl.pallas_call(
            _copy_kernel,
            out_shape=out_shape,
            grid=(grid_t,),
            in_specs=[pl.BlockSpec((batch, t), lambda i: (0, i))],
            out_specs=out_spec,
            compiler_params=compiler_params,
        )(signal)

    # Zero-pad: n_in < buffer_size.
    if n_in <= t:
        # Whole input fits in one tile; keep it resident (block == full array,
        # constant block index -> no re-DMA across grid steps).
        kernel = functools.partial(_pad_small_kernel, n_in=n_in)
        in_spec = pl.BlockSpec((batch, n_in), lambda i: (0, 0))
    else:
        seam_block, rem = divmod(n_in, t)
        in_last = pl.cdiv(n_in, t) - 1
        kernel = functools.partial(_pad_tiled_kernel,
                                   seam_block=seam_block, rem=rem)
        # Clamp the input block index so tiles past the input end stay in
        # bounds (their data is unused; those tiles write zeros).
        in_spec = pl.BlockSpec((batch, t),
                               lambda i: (0, jnp.minimum(i, in_last)))

    return pl.pallas_call(
        kernel,
        out_shape=out_shape,
        grid=(grid_t,),
        in_specs=[in_spec],
        out_specs=out_spec,
        compiler_params=compiler_params,
    )(signal)


def seconds_to_samples(seconds: jax.Array, sample_rate: float) -> jax.Array:
    """Pallas equivalent of SynthModule.seconds_to_samples."""
    orig_shape = seconds.shape
    x = seconds
    if x.ndim == 0:
        x = x.reshape(1, 1)
    elif x.ndim == 1:
        x = x.reshape(1, -1)  # lane-dense 2-D layout for small 1-D parameters

    out = pl.pallas_call(
        _make_scale_kernel(float(sample_rate)),
        out_shape=jax.ShapeDtypeStruct(x.shape, x.dtype),
        in_specs=[pl.BlockSpec(memory_space=pltpu.MemorySpace.VMEM)],
        out_specs=pl.BlockSpec(memory_space=pltpu.MemorySpace.VMEM),
    )(x)
    return out.reshape(orig_shape)


class SynthModuleJax:
    """JAX/Pallas port of torchsynth's SynthModule base class.

    Holds the shared synth configuration (batch_size, sample_rate,
    buffer_size) and the batch-length normalized [0,1] parameter dict.
    """

    default_parameter_ranges = None  # base class defines no parameters

    def __init__(self, batch_size: int, sample_rate: float, buffer_size: int,
                 key: jax.Array | None = None):
        self.batch_size = batch_size
        self.sample_rate = float(sample_rate)
        self.buffer_size = int(buffer_size)
        self.eps = 1e-6
        # torchparameters: name -> (batch_size,) tensor in [0, 1], initialized
        # with uniform noise (torch.rand) — none for the base class.
        self.torchparameters = {}
        if self.default_parameter_ranges is not None and key is not None:
            for i, name in enumerate(self.default_parameter_ranges):
                self.torchparameters[name] = jax.random.uniform(
                    jax.random.fold_in(key, i), (batch_size,), dtype=jnp.float32
                )

    @property
    def nyquist(self) -> float:
        return self.sample_rate / 2.0

    def get_parameter_0to1(self, parameter_id: str) -> jax.Array:
        return self.torchparameters[parameter_id]

    def set_parameter_0to1(self, parameter_id: str, value: jax.Array):
        assert value.shape == (self.batch_size,)
        self.torchparameters[parameter_id] = value

    def to_buffer_size(self, signal: jax.Array) -> jax.Array:
        return to_buffer_size(signal, self.buffer_size)

    def seconds_to_samples(self, seconds: jax.Array) -> jax.Array:
        return seconds_to_samples(seconds, self.sample_rate)

    def output(self, *args, **kwargs) -> jax.Array:
        # TODO(synk): output() is abstract in the PyTorch base class; derived
        # classes must override it — there is no base-class compute to port.
        raise NotImplementedError("Derived classes must override this method")

    def forward(self, signal: jax.Array) -> jax.Array:
        # Base-class forward wraps output(); since output() is abstract, the
        # concrete documented contract (fix to buffer_size) is applied here.
        return self.to_buffer_size(signal)


if __name__ == "__main__":
    key = jax.random.PRNGKey(0)
    batch_size = 2
    sample_rate = 16000.0
    buffer_size = 256  # small, lane-aligned buffer

    module = SynthModuleJax(batch_size, sample_rate, buffer_size, key=key)

    k1, k2, k3, k4 = jax.random.split(key, 4)

    # Short input (192 < 256): forward must zero-pad to buffer_size.
    sig_short = jax.random.normal(k1, (batch_size, 192), dtype=jnp.float32)
    out_pad = module.forward(sig_short)
    jax.block_until_ready(out_pad)
    assert out_pad.shape == (batch_size, buffer_size)
    assert jnp.allclose(out_pad[:, :192], sig_short)
    assert jnp.all(out_pad[:, 192:] == 0.0)

    # Long input (384 > 256): forward must truncate to buffer_size.
    sig_long = jax.random.normal(k2, (batch_size, 384), dtype=jnp.float32)
    out_trunc = module.forward(sig_long)
    jax.block_until_ready(out_trunc)
    assert out_trunc.shape == (batch_size, buffer_size)
    assert jnp.allclose(out_trunc, sig_long[:, :buffer_size])

    # Exact-length input: passes through unchanged.
    sig_exact = jax.random.normal(k1, (batch_size, buffer_size), dtype=jnp.float32)
    out_exact = module.forward(sig_exact)
    jax.block_until_ready(out_exact)
    assert jnp.allclose(out_exact, sig_exact)

    # Multi-tile grid paths (force a small 256-lane tile over a 1024 buffer to
    # exercise copy / seam / zero tiles and the pipelined grid).
    big_buffer = 1024
    sig_pad_mt = jax.random.normal(k3, (batch_size, 640), dtype=jnp.float32)
    out_pad_mt = to_buffer_size(sig_pad_mt, big_buffer, max_time_tile=256)
    jax.block_until_ready(out_pad_mt)
    ref_pad_mt = jnp.pad(sig_pad_mt, ((0, 0), (0, big_buffer - 640)))
    assert out_pad_mt.shape == (batch_size, big_buffer)
    assert jnp.allclose(out_pad_mt, ref_pad_mt)

    sig_trunc_mt = jax.random.normal(k4, (batch_size, 2048), dtype=jnp.float32)
    out_trunc_mt = to_buffer_size(sig_trunc_mt, big_buffer, max_time_tile=256)
    jax.block_until_ready(out_trunc_mt)
    assert jnp.allclose(out_trunc_mt, sig_trunc_mt[:, :big_buffer])

    # seconds_to_samples: elementwise multiply by sample_rate (2-D and 1-D).
    secs2d = jax.random.uniform(k1, (batch_size, 128), dtype=jnp.float32)
    samples2d = module.seconds_to_samples(secs2d)
    jax.block_until_ready(samples2d)
    assert jnp.allclose(samples2d, secs2d * sample_rate, rtol=1e-6)

    secs1d = jax.random.uniform(k2, (batch_size,), dtype=jnp.float32)
    samples1d = module.seconds_to_samples(secs1d)
    jax.block_until_ready(samples1d)
    assert samples1d.shape == (batch_size,)
    assert jnp.allclose(samples1d, secs1d * sample_rate, rtol=1e-6)

    print("KERNEL_OK")
</pallas_src>

<mosaic_0001>
module attributes {stable_mosaic.version = 11 : i64} {
  func.func @_pad_small_kernel(%arg0: i32, %arg1: memref<2x192xf32, #tpu.memory_space<vmem>>, %arg2: memref<2x256xf32, #tpu.memory_space<vmem>>) attributes {dimension_semantics = [#tpu.dimension_semantics<parallel>], iteration_bounds = array<i64: 1>, scalar_prefetch = 0 : i64, scratch_operands = 0 : i64, tpu.core_type = #tpu.core_type<tc>, window_params = [{pipeline_mode = #tpu.pipeline_mode<synchronous>, transform_indices = @transform_0, window_bounds = array<i64: 2, 192>}, {transform_indices = @transform_1, window_bounds = array<i64: 2, 256>}]} {
    %cst = arith.constant 0.000000e+00 : f32
    %0 = vector.broadcast %cst : f32 to vector<2x256xf32>
    %c0 = arith.constant 0 : index
    %c0_0 = arith.constant 0 : index
    %1 = vector.load %arg2[%c0, %c0_0] : memref<2x256xf32, #tpu.memory_space<vmem>>, vector<2x256xf32>
    tpu.vector_store %arg2[%c0, %c0_0], %0 {strides = array<i32>} : memref<2x256xf32, #tpu.memory_space<vmem>>, vector<2x256xf32>,
    %c0_i32 = arith.constant 0 : i32
    %2 = arith.cmpi eq, %arg0, %c0_i32 : i32
    %3 = arith.extui %2 : i1 to i32
    %c0_i32_1 = arith.constant 0 : i32
    %4 = arith.cmpi ne, %3, %c0_i32_1 : i32
    scf.if %4 {
      %c0_2 = arith.constant 0 : index
      %c0_3 = arith.constant 0 : index
      %5 = vector.load %arg1[%c0_2, %c0_3] : memref<2x192xf32, #tpu.memory_space<vmem>>, vector<2x192xf32>
      %c0_4 = arith.constant 0 : index
      %c0_5 = arith.constant 0 : index
      %6 = vector.load %arg2[%c0_4, %c0_5] : memref<2x256xf32, #tpu.memory_space<vmem>>, vector<2x192xf32>
      tpu.vector_store %arg2[%c0_4, %c0_5], %5 {strides = array<i32>} : memref<2x256xf32, #tpu.memory_space<vmem>>, vector<2x192xf32>,
    } else {
    }
    return
  }
  func.func @transform_0(%arg0: i32) -> (i32, i32) {
    %c0_i32 = arith.constant 0 : i32
    %c0_i32_0 = arith.constant 0 : i32
    %c0_i32_1 = arith.constant 0 : i32
    return %c0_i32, %c0_i32_0 : i32, i32
  }
  func.func @transform_1(%arg0: i32) -> (i32, i32) {
    %c0_i32 = arith.constant 0 : i32
    %c0_i32_0 = arith.constant 0 : i32
    return %c0_i32, %arg0 : i32, i32
  }
}

</mosaic_0001>

<bundles_post_ra>
// kernel: tpu_custom_call.1
= control target key start
LH: loop header
LB: loop body
LE: loop exit
PB: predicated region body
PF: predicated region fallthrough
CT: control target
= control target key end

     0   :  { %6 = vsyncpa [#allocation3], 0  ;;  %s124_s0 = inlined_call_operand.hbm [shape: f32[2,192], index: 0, kind: input, shape index: {}]   ;;  %s125_s1 = inlined_call_operand.hbm [shape: f32[2,256], index: 1, kind: output, shape index: {}]  }
   0x1   :  { %7 = vsyncpa [#allocation4], 0  ;;  %s13_s8 = sshll.u32 %s124_s0, 4  ;;  %s105_s9 = smov [#allocation2]   ;;  %s14_s8 = int_to_ptr.hbm [resolvable:$true] %s13_s8 }
   0x2   :  { %s15_s10 = sshll.u32 %s105_s9, 4  ;;  %s16_s10 = int_to_ptr.vmem [resolvable:$true] %s15_s10 }
   0x3   :  { %18 = dma.hbm_to_vmem [thread:$0]  %s14_s8, 64, %s16_s10, [#allocation3]  }
   0x4   :  { %101 = dma.done.wait [#allocation3], 64  }
   0x5   :  { %102 = vsyncadd [#allocation3], 4294967232  ;;  %v106_v0 = vmov 0.0   ;;  %vm29_vm0 = vcmask 1041408   ;;  %vm30_vm1 = vcmask 519170   ;;  %s107_s11 = smov [#allocation5]  }
   0x6   :  { %23 = vst [vmem:[#allocation5] sm:$0xf] %v106_v0  ;;  %s38_s12 = sshll.u32 %s107_s11, 4  ;;  %s40_s15 = sshll.u32 %s125_s1, 4  ;;  %vm31_vm2 = vmor %vm30_vm1, %vm29_vm0  ;;  %v28_v1 = vld [vmem:[#allocation2] sm:$0xf]  ;;  %s39_s12 = int_to_ptr.vmem [resolvable:$true] %s38_s12  ;;  %s41_s15 = int_to_ptr.hbm [resolvable:$true] %s40_s15 }
   0x7   :  { %32 = vst.msk [vmem:[#allocation5] sm:$0xf] %vm31_vm2, %v28_v1 }
   0x8   :  { %43 = dma.vmem_to_hbm [thread:$0]  %s39_s12, 64, %s41_s15, [#allocation4]  }
   0x9   :  { %103 = dma.done.wait [#allocation4], 64  }
   0xa   :  { %104 = vsyncadd [#allocation4], 4294967232 }
   0xb   :  { %48 = vsyncpa [#allocation3], 1 }
   0xc   :  { %49 = vsyncpa [#allocation4], 1 }

</bundles_post_ra>
